<compile_context>
chip_gen: v7x
topology: tpu7x:2x2x1
jax: 0.10.0
libtpu: 0.0.40
codegen_flags: <defaults>
</compile_context>

<pallas_src>
import functools

import jax
import jax.numpy as jnp
from jax import lax
from jax.experimental import pallas as pl
from jax.experimental.pallas import tpu as pltpu


def _decode_kernel(off_ref, anc_ref, pred_ref, out_ref, *, hw, chunked):
    """off_ref: (1, 2*HW) = [gx | gy] cell offsets (f32).
    anc_ref: (A, 2) stride-scaled anchors [[aw, ah], ...] (f32).
    chunked:   pred_ref/out_ref are (A, HW) for attr k = program_id(1).
    unchunked: pred_ref is (A, >=4*HW), out_ref is (A, 4*HW)."""
    if chunked:
        k = pl.program_id(1)                       # attr index: 0=x 1=y 2=w 3=h
        t = pred_ref[...].astype(jnp.float32)      # one lane-dense load (A, HW)

        @pl.when(k < 2)
        def _():
            off = jnp.where(k == 0, off_ref[:, 0:hw], off_ref[:, hw:2 * hw])
            out_ref[...] = jax.nn.sigmoid(t) + off

        @pl.when(k >= 2)
        def _():
            scale = jnp.where(k == 2, anc_ref[:, 0:1], anc_ref[:, 1:2])
            out_ref[...] = jnp.exp(t) * scale
    else:
        # Fallback (HW not a multiple of 128): one step per batch element,
        # single load of the xywh lane range, single concatenated store.
        t = pred_ref[:, 0:4 * hw].astype(jnp.float32)
        xy = jax.nn.sigmoid(t[:, 0:2 * hw]) + off_ref[...]
        bw = jnp.exp(t[:, 2 * hw:3 * hw]) * anc_ref[:, 0:1]
        bh = jnp.exp(t[:, 3 * hw:4 * hw]) * anc_ref[:, 1:2]
        out_ref[...] = jnp.concatenate([xy, bw, bh], axis=-1)


class DecodeBox:
    def __init__(self, anchors, num_classes, img_size):
        self.anchors = anchors
        self.num_anchors = len(anchors)
        self.num_classes = num_classes
        self.bbox_attrs = 5 + num_classes
        self.img_size = img_size

    def __call__(self, x, channel_first_boxes=False):
        B, C, H, W = x.shape
        A = self.num_anchors
        HW = H * W
        assert C == A * self.bbox_attrs, (C, A, self.bbox_attrs)
        stride_h = self.img_size[1] / H
        stride_w = self.img_size[0] / W
        scaled_anchors = jnp.asarray(
            [(aw / stride_w, ah / stride_h) for aw, ah in self.anchors],
            dtype=jnp.float32)                                   # (A, 2)

        # Free, contiguous reshape: per anchor, attr t / position (h, w) lives
        # at lane t*HW + h*W + w, so x/y/w/h are the contiguous range [0, 4*HW).
        pred = x.reshape(B, A, self.bbox_attrs * HW)

        # (1, 2*HW) cell offsets [gx | gy], flattened row-major like pred.
        gx = lax.broadcasted_iota(jnp.float32, (H, W), 1).reshape(1, HW)
        gy = lax.broadcasted_iota(jnp.float32, (H, W), 0).reshape(1, HW)
        off_xy = jnp.concatenate([gx, gy], axis=1)

        chunked = (HW % 128 == 0)
        kernel = functools.partial(_decode_kernel, hw=HW, chunked=chunked)

        if chunked:
            grid = (B, 4)
            in_specs = [
                pl.BlockSpec((1, 2 * HW), lambda b, k: (0, 0)),
                pl.BlockSpec((A, 2), lambda b, k: (0, 0)),
                pl.BlockSpec((None, A, HW), lambda b, k: (b, 0, k)),
            ]
            out_specs = pl.BlockSpec((None, A, HW), lambda b, k: (b, 0, k))
            dims = ("parallel", "parallel")
            pred_lane_bytes = 4 * HW * x.dtype.itemsize
        else:
            # TODO(synk): a manual strided DMA (memory_space=pl.ANY) could skip
            # the unused conf/class attrs here too; for now load what the
            # (8,128) block constraint allows.
            pred_w = 4 * HW if (4 * HW) % 128 == 0 else self.bbox_attrs * HW
            grid = (B,)
            in_specs = [
                pl.BlockSpec((1, 2 * HW), lambda b: (0, 0)),
                pl.BlockSpec((A, 2), lambda b: (0, 0)),
                pl.BlockSpec((None, A, pred_w), lambda b: (b, 0, 0)),
            ]
            out_specs = pl.BlockSpec((None, A, 4 * HW), lambda b: (b, 0, 0))
            dims = ("parallel",)
            pred_lane_bytes = pred_w * x.dtype.itemsize

        in_bytes = (B * A * pred_lane_bytes
                    + off_xy.size * 4 + scaled_anchors.size * 4)
        out_bytes = B * A * 4 * HW * 4

        out = pl.pallas_call(
            kernel,
            out_shape=jax.ShapeDtypeStruct((B, A, 4 * HW), jnp.float32),
            grid=grid,
            in_specs=in_specs,
            out_specs=out_specs,
            compiler_params=pltpu.CompilerParams(dimension_semantics=dims),
            cost_estimate=pl.CostEstimate(
                flops=2 * B * A * 4 * HW,
                transcendentals=B * A * 4 * HW,
                bytes_accessed=in_bytes + out_bytes,
            ),
        )(off_xy, scaled_anchors, pred)

        boxes = out.reshape(B, A, 4, H, W)
        if channel_first_boxes:
            return boxes                       # skip the extra transpose pass
        # Match the PyTorch return layout (B, A, H, W, 4).
        return jnp.transpose(boxes, (0, 1, 3, 4, 2))


def _reference(x, anchors, num_classes, img_size):
    # Pure-JAX reference mirroring the PyTorch forward exactly.
    B, _, H, W = x.shape
    A = len(anchors)
    bbox_attrs = 5 + num_classes
    stride_h = img_size[1] / H
    stride_w = img_size[0] / W
    scaled = jnp.asarray(
        [(aw / stride_w, ah / stride_h) for aw, ah in anchors], jnp.float32)
    pred = jnp.transpose(
        x.reshape(B, A, bbox_attrs, H, W), (0, 1, 3, 4, 2)).astype(jnp.float32)
    tx = jax.nn.sigmoid(pred[..., 0])
    ty = jax.nn.sigmoid(pred[..., 1])
    tw = pred[..., 2]
    th = pred[..., 3]
    gx = jnp.broadcast_to(jnp.arange(W, dtype=jnp.float32)[None, :], (H, W))
    gy = jnp.broadcast_to(jnp.arange(H, dtype=jnp.float32)[:, None], (H, W))
    aw = scaled[:, 0][None, :, None, None]
    ah = scaled[:, 1][None, :, None, None]
    bx = tx + gx
    by = ty + gy
    bw = jnp.exp(tw) * aw
    bh = jnp.exp(th) * ah
    return jnp.stack([bx, by, bw, bh], axis=-1)


if __name__ == "__main__":
    # small config: batch=2, 3 anchors, 2 classes -> bbox_attrs=7, 16x16 map
    anchors = [(10.0, 13.0), (16.0, 30.0), (33.0, 23.0)]
    num_classes = 2
    img_size = (128, 128)
    B, A, H, W = 2, len(anchors), 16, 16
    C = A * (5 + num_classes)  # 21

    key = jax.random.PRNGKey(0)
    x = jax.random.normal(key, (B, C, H, W), dtype=jnp.float32)

    decoder = DecodeBox(anchors, num_classes, img_size)
    pred_boxes = decoder(x)
    pred_boxes = jax.block_until_ready(pred_boxes)

    ref = _reference(x, anchors, num_classes, img_size)
    assert pred_boxes.shape == (B, A, H, W, 4), pred_boxes.shape
    assert jnp.allclose(pred_boxes, ref, atol=1e-4, rtol=1e-5), "mismatch vs reference"
    print("KERNEL_OK")
</pallas_src>

<mosaic_0001>
module attributes {stable_mosaic.version = 11 : i64} {
  func.func @_decode_kernel(%arg0: i32, %arg1: i32, %arg2: memref<1x512xf32, #tpu.memory_space<vmem>>, %arg3: memref<3x2xf32, #tpu.memory_space<vmem>>, %arg4: memref<1x3x256xf32, #tpu.memory_space<vmem>>, %arg5: memref<1x3x256xf32, #tpu.memory_space<vmem>>) attributes {dimension_semantics = [#tpu.dimension_semantics<parallel>, #tpu.dimension_semantics<parallel>], iteration_bounds = array<i64: 2, 4>, scalar_prefetch = 0 : i64, scratch_operands = 0 : i64, tpu.core_type = #tpu.core_type<tc>, window_params = [{pipeline_mode = #tpu.pipeline_mode<synchronous>, transform_indices = @transform_0, window_bounds = array<i64: 1, 512>}, {pipeline_mode = #tpu.pipeline_mode<synchronous>, transform_indices = @transform_1, window_bounds = array<i64: 3, 2>}, {transform_indices = @transform_2, window_bounds = array<i64: 1, 3, 256>}, {transform_indices = @transform_3, window_bounds = array<i64: 1, 3, 256>}]} {
    %c0 = arith.constant 0 : index
    %c0_0 = arith.constant 0 : index
    %c0_1 = arith.constant 0 : index
    %0 = vector.load %arg4[%c0, %c0_0, %c0_1] : memref<1x3x256xf32, #tpu.memory_space<vmem>>, vector<1x3x256xf32>
    %1 = vector.shape_cast %0 : vector<1x3x256xf32> to vector<3x256xf32>
    %c2_i32 = arith.constant 2 : i32
    %2 = arith.cmpi slt, %arg1, %c2_i32 : i32
    %3 = arith.extui %2 : i1 to i32
    %c0_i32 = arith.constant 0 : i32
    %4 = arith.cmpi ne, %3, %c0_i32 : i32
    scf.if %4 {
      %c0_i32_4 = arith.constant 0 : i32
      %8 = arith.cmpi eq, %arg1, %c0_i32_4 : i32
      %c0_5 = arith.constant 0 : index
      %c0_6 = arith.constant 0 : index
      %9 = vector.load %arg2[%c0_5, %c0_6] : memref<1x512xf32, #tpu.memory_space<vmem>>, vector<1x256xf32>
      %c0_7 = arith.constant 0 : index
      %c256 = arith.constant 256 : index
      %10 = vector.load %arg2[%c0_7, %c256] : memref<1x512xf32, #tpu.memory_space<vmem>>, vector<1x256xf32>
      %11 = arith.select %8, %9, %10 : vector<1x256xf32>
      %12 = arith.negf %1 : vector<3x256xf32>
      %13 = math.exp %12 : vector<3x256xf32>
      %cst = arith.constant 1.000000e+00 : f32
      %14 = vector.broadcast %cst : f32 to vector<3x256xf32>
      %15 = arith.addf %14, %13 : vector<3x256xf32>
      %16 = arith.divf %14, %15 : vector<3x256xf32>
      %17 = vector.broadcast %11 : vector<1x256xf32> to vector<3x256xf32>
      %18 = arith.addf %16, %17 : vector<3x256xf32>
      %c0_8 = arith.constant 0 : index
      %c0_9 = arith.constant 0 : index
      %c0_10 = arith.constant 0 : index
      %19 = vector.load %arg5[%c0_8, %c0_9, %c0_10] : memref<1x3x256xf32, #tpu.memory_space<vmem>>, vector<1x3x256xf32>
      %20 = vector.shape_cast %19 : vector<1x3x256xf32> to vector<3x256xf32>
      %21 = vector.shape_cast %18 : vector<3x256xf32> to vector<1x3x256xf32>
      tpu.vector_store %arg5[%c0_8, %c0_9, %c0_10], %21 {strides = array<i32>} : memref<1x3x256xf32, #tpu.memory_space<vmem>>, vector<1x3x256xf32>,
    } else {
    }
    %c2_i32_2 = arith.constant 2 : i32
    %5 = arith.cmpi sge, %arg1, %c2_i32_2 : i32
    %6 = arith.extui %5 : i1 to i32
    %c0_i32_3 = arith.constant 0 : i32
    %7 = arith.cmpi ne, %6, %c0_i32_3 : i32
    scf.if %7 {
      %c2_i32_4 = arith.constant 2 : i32
      %8 = arith.cmpi eq, %arg1, %c2_i32_4 : i32
      %c0_5 = arith.constant 0 : index
      %c0_6 = arith.constant 0 : index
      %9 = vector.load %arg3[%c0_5, %c0_6] : memref<3x2xf32, #tpu.memory_space<vmem>>, vector<3x1xf32>
      %c0_7 = arith.constant 0 : index
      %c1 = arith.constant 1 : index
      %10 = vector.load %arg3[%c0_7, %c1] : memref<3x2xf32, #tpu.memory_space<vmem>>, vector<3x1xf32>
      %11 = arith.select %8, %9, %10 : vector<3x1xf32>
      %12 = math.exp %1 : vector<3x256xf32>
      %13 = vector.broadcast %11 : vector<3x1xf32> to vector<3x256xf32>
      %14 = arith.mulf %12, %13 : vector<3x256xf32>
      %c0_8 = arith.constant 0 : index
      %c0_9 = arith.constant 0 : index
      %c0_10 = arith.constant 0 : index
      %15 = vector.load %arg5[%c0_8, %c0_9, %c0_10] : memref<1x3x256xf32, #tpu.memory_space<vmem>>, vector<1x3x256xf32>
      %16 = vector.shape_cast %15 : vector<1x3x256xf32> to vector<3x256xf32>
      %17 = vector.shape_cast %14 : vector<3x256xf32> to vector<1x3x256xf32>
      tpu.vector_store %arg5[%c0_8, %c0_9, %c0_10], %17 {strides = array<i32>} : memref<1x3x256xf32, #tpu.memory_space<vmem>>, vector<1x3x256xf32>,
    } else {
    }
    return
  }
  func.func @transform_0(%arg0: i32, %arg1: i32) -> (i32, i32) {
    %c0_i32 = arith.constant 0 : i32
    %c0_i32_0 = arith.constant 0 : i32
    %c0_i32_1 = arith.constant 0 : i32
    return %c0_i32, %c0_i32_0 : i32, i32
  }
  func.func @transform_1(%arg0: i32, %arg1: i32) -> (i32, i32) {
    %c0_i32 = arith.constant 0 : i32
    %c0_i32_0 = arith.constant 0 : i32
    %c0_i32_1 = arith.constant 0 : i32
    return %c0_i32, %c0_i32_0 : i32, i32
  }
  func.func @transform_2(%arg0: i32, %arg1: i32) -> (i32, i32, i32) {
    %c0_i32 = arith.constant 0 : i32
    %c0_i32_0 = arith.constant 0 : i32
    return %arg0, %c0_i32, %arg1 : i32, i32, i32
  }
  func.func @transform_3(%arg0: i32, %arg1: i32) -> (i32, i32, i32) {
    %c0_i32 = arith.constant 0 : i32
    %c0_i32_0 = arith.constant 0 : i32
    return %arg0, %c0_i32, %arg1 : i32, i32, i32
  }
}

</mosaic_0001>

<bundles_post_ra>
// kernel: tpu_custom_call.1
= control target key start
LH: loop header
LB: loop body
LE: loop exit
PB: predicated region body
PF: predicated region fallthrough
CT: control target
= control target key end

     0   :  { %s490_s12 = smov 0   ;;  %s492_s13 = smov 0   ;;  %s561_s0 = inlined_call_operand.vmem [shape: f32[1,512], index: 0, kind: input, shape index: {}]   ;;  %s562_s1 = inlined_call_operand.vmem [shape: f32[3,2], index: 1, kind: input, shape index: {}]   ;;  %s563_s2 = inlined_call_operand.vmem [shape: f32[2,3,1792], index: 2, kind: input, shape index: {}]   ;;  %s564_s3 = inlined_call_operand.vmem [shape: f32[2,3,1024], index: 3, kind: output, shape index: {}]  }
   0x1   :  { %s494_s14 = smov 0   ;;  %s496_s15 = smov 0  }
   0x2   :  { %s498_s16 = smov 0  }
   0x3 LB: > { %s22_s17 = sadd.s32 1, %s457_s14  ;;  %s25_s18 = sadd.s32 1, %s461_s15  ;;  %s465_s16 = sphi %s498_s16, %s13_s16   ;;  %s461_s15 = sphi %s496_s15, %s568_s15   ;;  %s457_s14 = sphi %s494_s14, %s567_s14   ;;  %s453_s13 = sphi %s492_s13, %s566_s13   ;;  %s449_s12 = sphi %s490_s12, %s565_s12  }
   0x4   : > { %p23_p0 = scmp.ge.s32.totalorder %s22_s17, 4  ;;  %p365_p1 = scmp.ge.s32.totalorder %s465_s16, 1 }
   0x5   : > { %p158_p2 = scmp.lt.s32.totalorder %s465_s16, 9 }
   0x6   : > { %s570_s17 = smov (%p23_p0, %s22_s17), 0  ;;  %s572_s18 = smov (!%p23_p0, %s25_s18), %s461_s15 }
   0x7   : > { %p159_p3 = pnand %p365_p1, %p158_p2  ;;  %p27_p4 = scmp.ge.s32.totalorder %s572_s18, 2 }
   0x8   : > { %s366_s19 = sshll.u32 (!%p159_p3), %s449_s12, 1  ;;  %p191_p5 = scmp.lt.s32.totalorder (!%p159_p3), %s453_s13, 1 }
   0x9   : > { %s574_s18 = smov (%p27_p4, %s572_s18), 0  ;;  %162 = sbr.rel (%p159_p3) target bundleno = 304 (0x130), region = 32 }
   0xa   : > { %p193_p6 = scmp.lt.s32.totalorder (!%p159_p3), %s366_s19, 13  ;;  %p203_p7 = scmp.lt.s32.totalorder (!%p159_p3), %s366_s19, 7 }
   0xb   : > { %p371_p8 = scmp.ge.s32.totalorder (!%p159_p3), %s449_s12, 2 }
  0x10   : > { %s576_s13 = smov (!%p191_p5, %s453_s13), 1  ;;  %p215_p9 = scmp.eq.s32.totalorder (!%p371_p8), %s449_s12, 0  ;;  %v229_v2 = vlaneseq (!%p371_p8)  ;;  %v216_v6 = vld [vmem:[%s561_s0] sm:$0x3] (!%p371_p8)  ;;  %v217_v7 = vld [vmem:[%s561_s0 + $0x2] sm:$0x3] (!%p371_p8) }
  0x11   : > { %s194_s20 = scalar_select %p193_p6, %s366_s19, 13 }
  0x12   : > { %s376_s21 = smul.u32 14, %s576_s13  ;;  %s369_s22 = sshll.u32 %s576_s13, 3  ;;  %v230_v4 = vshrl.u32 (!%p371_p8), %v229_v2, 7 }
  0x13   : > { %s578_s19 = smov (!%p203_p7, %s366_s19), 7  ;;  %214 = sbr.rel (%p371_p8) target bundleno = 53 (0x35), region = 36 }
  0x14   : > { %s196_s23 = sadd.s32 %s376_s21, %s194_s20  ;;  %s206_s25 = sadd.s32 %s369_s22, %s578_s19  ;;  %v231_v9 = vsub.s32 (!%p371_p8), 0, %v230_v4  ;;  %v235_v10 = vsub.s32 (!%p371_p8), 1, %v230_v4 }
  0x15   : > { %s367_s24 = sshll.u32 %s196_s23, 2  ;;  %s370_s29 = sshll.u32 %s206_s25, 2 }
  0x16   : > { %s198_s28 = scalar_lea.vmem %s563_s2, %s367_s24  ;;  %s529_s5 = scalar_lea.vmem %s564_s3, %s370_s29 }
  0x17   : > { %v210_v0 = vld [vmem:[%s198_s28] sm:$0x77] }
  0x18   : > { %v372_v1 = vmul.f32 (!%p371_p8), -1.442695, %v210_v0 }
  0x1a   : > { %420 = vpow2.f32 %v372_v1  ;;  %s218_s6 = scalar_select %p215_p9, 1, 0 }
  0x1c   : > { %v219_v3 = vstv %s218_s6 }
  0x1d   : > { %vm220_vm0 = vcmp.eq.s32.totalorder %v219_v3, 1 }
  0x1e   : > { %v221_v11 = vsel %vm220_vm0, %v216_v6, %v217_v7 }
  0x1f   : > { %v232_v12 = vrot.slane %v221_v11, %v231_v9  ;;  %v236_v13 = vrot.slane %v221_v11, %v235_v10 }
  0x21   : > { %v237_v14 = vcombine.low %v232_v12, %v236_v13 }
  0x24   : > { %v421_v5 = vpop.eup %420 }
  0x25   : > { %v225_v8 = vadd.f32 1.0, %v421_v5 }
  0x27   : > { %422 = vrcp.f32 %v225_v8 }
  0x31   : > { %v423_v15 = vpop.eup %422 }
  0x32   : > { %v239_v16 = vadd.f32 %v423_v15, %v237_v14 }
  0x34   : > { %240 = vst [vmem:[%s529_s5] sm:$0x77] %v239_v16 }
  0x35 PF: > { %p373_p10 = scmp.lt.s32.totalorder %s449_s12, 2 }
  0x36   : > { %v246_v17 = vld [vmem:[%s562_s1] sm:$0x7] (!%p373_p10)  ;;  %s467_s19 = smov (!%p373_p10), 127   ;;  %v468_v18 = vmov (!%p373_p10), 0   ;;  %p245_p11 = scmp.eq.s32.totalorder (!%p373_p10), %s449_s12, 2  ;;  %v264_v25 = vlaneseq (!%p373_p10) }
  0x37   : > { %244 = sbr.rel (%p373_p10) target bundleno = 304 (0x130), region = 40  ;;  %251 = vrot.lane.b32.xlu0 (!%p373_p10), %v246_v17, %s467_s19  ;;  %v255_v22 = vmul.f32 (!%p373_p10), 1.442695, %v210_v0  ;;  %v469_v23 = vmov (!%p373_p10), 839922192  }
  0x38   : > { %424 = vset.pattern.permute.xlu0 (!%p373_p10), %v468_v18  ;;  %v262_v24 = vunpack.c.l.s4 (!%p373_p10), %v469_v23  ;;  %v265_v27 = vshrl.u32 (!%p373_p10), %v264_v25, 7 }
  0x39   : > { %425 = vpow2.f32 (!%p373_p10), %v255_v22 }
  0x3a   : > { %v263_v26 = vunpack.c.0.s8 (!%p373_p10), %v262_v24 }
  0x3c   : > { %v266_v28 = vsub.s32 (!%p373_p10), %v263_v26, %v265_v27 }
  0x3e   : > { %s247_s20 = scalar_select %p245_p11, 1, 0 }
  0x40   : > { %v248_v19 = vstv %s247_s20 }
  0x41   : > { %vm249_vm1 = vcmp.eq.s32.totalorder %v248_v19, 1 }
  0x43   : > { %v426_v29 = vpop.eup %425 }
  0xa9   : > { %v252_v20 = vpop.permute.xlu0 %251 }
  0xaa   : > { %v254_v21 = vsel %vm249_vm1, %v246_v17, %v252_v20 }
  0xab   : > { %259 = vperm.xlu0 %424, %v254_v21  }
 0x12a   : > { %v260_v30 = vpop.permute.xlu0 %259 }
 0x12b   : > { %v267_v31 = vrot.slane %v260_v30, %v266_v28 }
 0x12d   : > { %v269_v32 = vmul.f32 %v426_v29, %v267_v31 }
 0x12f   : > { %270 = vst [vmem:[%s529_s5] sm:$0x77] %v269_v32 }
 0x130 PF: > { %s13_s16 = sadd.s32 1, %s465_s16   ;;  %s565_s12 = smov %s457_s14 }
 0x131   : > { %p10_p12 = scmp.ge.s32.totalorder %s13_s16, 10   ;;  %s566_s13 = smov %s461_s15 }
 0x132   : > { %s567_s14 = smov %s570_s17  ;;  %s568_s15 = smov %s574_s18 }
 0x133   :  { %12 = sbr.rel (!%p10_p12) target bundleno = 3 (0x3), region = 70 }

</bundles_post_ra>
